<compile_context>
chip_gen: v6e
topology: v6e:2x2x1
jax: 0.10.0
libtpu: 0.0.40
codegen_flags: <defaults>
</compile_context>

<pallas_src>
import jax
import jax.numpy as jnp
from jax.experimental import pallas as pl
from jax.experimental.pallas import tpu as pltpu


def _round_up(x, m):
    return ((x + m - 1) // m) * m


def _vmem_capacity_bytes(default=64 * 1024 * 1024):
    try:
        return int(getattr(pltpu.get_tpu_info(), "vmem_capacity_bytes", default))
    except Exception:
        return default


def _mlp_policy_kernel(x_ref, w1_ref, b1_ref, w2_ref, b2_ref, w3_ref, b3_ref,
                       o_ref):
    # In-kernel bf16 cast of the f32 state tile (VPU), then MXU matmuls with
    # f32 accumulation; bias + ReLU on the VPU, tanh on the EUP.
    x = x_ref[...].astype(jnp.bfloat16)
    h = jnp.dot(x, w1_ref[...], preferred_element_type=jnp.float32)
    h = jnp.maximum(h + b1_ref[...], 0.0)
    h = jnp.dot(h.astype(jnp.bfloat16), w2_ref[...],
                preferred_element_type=jnp.float32)
    h = jnp.maximum(h + b2_ref[...], 0.0)
    out = jnp.dot(h.astype(jnp.bfloat16), w3_ref[...],
                  preferred_element_type=jnp.float32)
    o_ref[...] = jnp.tanh(out + b3_ref[...]).astype(o_ref.dtype)


def prepare_policy_params(params, *, lane=128):
    """One-time prep: zero-pad all matmul dims to lane multiples and pre-cast
    matmul operands to bf16.  Padding columns/rows are zeros, so the padded
    network computes exactly the original function on the real columns."""
    w1, b1 = params["w1"], params["b1"]
    w2, b2 = params["w2"], params["b2"]
    w3, b3 = params["w3"], params["b3"]
    S, H1 = w1.shape
    H2 = w2.shape[1]
    A = w3.shape[1]
    H1p, H2p, Ap = _round_up(H1, lane), _round_up(H2, lane), _round_up(A, lane)

    prepped = {
        "w1": jnp.pad(w1, ((0, 0), (0, H1p - H1))).astype(jnp.bfloat16),
        "b1": jnp.pad(b1, ((0, 0), (0, H1p - H1))),                       # f32
        "w2": jnp.pad(w2, ((0, H1p - H1), (0, H2p - H2))).astype(jnp.bfloat16),
        "b2": jnp.pad(b2, ((0, 0), (0, H2p - H2))),                       # f32
        "w3": jnp.pad(w3, ((0, H2p - H2), (0, Ap - A))).astype(jnp.bfloat16),
        "b3": jnp.pad(b3, ((0, 0), (0, Ap - A))),                         # f32
        "state_size": S,
        "action_size": A,
    }
    return prepped


def _choose_bm(B, block_m):
    # Aim for >=2 grid steps (so the 'parallel' axis shards across v7x's two
    # TensorCores) while keeping tiles large; never below the 8-sublane minimum.
    bm = min(block_m, _round_up(pl.cdiv(B, 2), 8))
    return max(bm, 8)


def policy_model_forward(state, prepped, *, block_m=1024):
    """Fused 3-layer MLP policy forward pass.

    state:   (B, state_size) float32
    prepped: output of prepare_policy_params (padded / bf16 weights)
    returns  (B, action_size) float32 in [-1, 1]
    """
    w1, b1 = prepped["w1"], prepped["b1"]
    w2, b2 = prepped["w2"], prepped["b2"]
    w3, b3 = prepped["w3"], prepped["b3"]
    A = prepped["action_size"]

    B, S = state.shape
    H1p = w1.shape[1]
    H2p = w2.shape[1]
    Ap = w3.shape[1]

    bm = _choose_bm(B, block_m)
    grid = (pl.cdiv(B, bm),)
    # NOTE: the last batch block may be ragged; out-of-bounds input rows hold
    # unspecified data, which is safe because rows are independent and Pallas
    # only writes back the in-bounds output rows.

    full = lambda shape: pl.BlockSpec(shape, lambda i: (0, 0))

    # Advisory cost estimate so XLA schedules surrounding ops sensibly.
    wgt_elems = S * H1p + H1p * H2p + H2p * Ap
    cost = pl.CostEstimate(
        flops=2 * B * wgt_elems,
        transcendentals=B * Ap,
        bytes_accessed=(B * S * 4            # f32 state read
                        + wgt_elems * 2      # bf16 weights
                        + (H1p + H2p + Ap) * 4
                        + B * Ap * 2),       # bf16 output write
    )

    # VMEM budget: double-buffered state/output tiles + weights + f32
    # intermediates, with headroom; capped at this generation's physical VMEM.
    wgt_bytes = wgt_elems * 2 + (H1p + H2p + Ap) * 4
    block_bytes = (2 * bm * S * 4
                   + 2 * bm * Ap * 2
                   + 2 * wgt_bytes
                   + bm * (H1p + H2p) * 4)
    vmem_limit = int(min(_vmem_capacity_bytes(),
                         max(32 * 1024 * 1024, 4 * block_bytes)))

    out = pl.pallas_call(
        _mlp_policy_kernel,
        out_shape=jax.ShapeDtypeStruct((B, Ap), jnp.bfloat16),
        grid_spec=pltpu.PrefetchScalarGridSpec(
            num_scalar_prefetch=0,
            grid=grid,
            in_specs=[
                pl.BlockSpec((bm, S), lambda i: (i, 0)),   # f32 state tile
                full((S, H1p)), full((1, H1p)),            # layer 1
                full((H1p, H2p)), full((1, H2p)),          # layer 2
                full((H2p, Ap)), full((1, Ap)),            # output layer
            ],
            out_specs=pl.BlockSpec((bm, Ap), lambda i: (i, 0)),
        ),
        compiler_params=pltpu.CompilerParams(
            dimension_semantics=("parallel",),
            vmem_limit_bytes=vmem_limit,
        ),
        cost_estimate=cost,
    )(state, w1, b1, w2, b2, w3, b3)

    # Strip the zero-padded action columns and return f32 actions.
    return out[:, :A].astype(jnp.float32)


def init_policy_params(key, state_size, hidden_dims, action_size):
    """Deterministic init mimicking torch.nn.Linear's U(-1/sqrt(fan_in), ...)."""
    dims = (state_size,) + tuple(hidden_dims) + (action_size,)
    params = {}
    names = ["1", "2", "3"]
    for idx, (fan_in, fan_out) in enumerate(zip(dims[:-1], dims[1:])):
        key, kw, kb = jax.random.split(key, 3)
        bound = 1.0 / jnp.sqrt(jnp.float32(fan_in))
        params[f"w{names[idx]}"] = jax.random.uniform(
            kw, (fan_in, fan_out), jnp.float32, -bound, bound)
        params[f"b{names[idx]}"] = jax.random.uniform(
            kb, (1, fan_out), jnp.float32, -bound, bound)
    return params


def policy_model_reference(state, params):
    """Pure-JAX f32 reference for correctness checking."""
    h = jnp.maximum(state @ params["w1"] + params["b1"], 0.0)
    h = jnp.maximum(h @ params["w2"] + params["b2"], 0.0)
    return jnp.tanh(h @ params["w3"] + params["b3"])


if __name__ == "__main__":
    # Shapes consistent with the module defaults:
    # state_size=32, hidden_dims=(300, 200), action_size=4, batch=20
    # (batch deliberately NOT a multiple of 8 to exercise the ragged last tile).
    batch = 20
    state_size = 32
    hidden_dims = (300, 200)
    action_size = 4

    key = jax.random.PRNGKey(0)
    key, kx = jax.random.split(key)
    params = init_policy_params(key, state_size, hidden_dims, action_size)
    state = jax.random.normal(kx, (batch, state_size), jnp.float32)

    prepped = prepare_policy_params(params)
    out = policy_model_forward(state, prepped)
    out = jax.block_until_ready(out)

    ref = policy_model_reference(state, params)
    assert out.shape == (batch, action_size)
    # bf16 matmul operands + bf16 output writeback with f32 accumulation ->
    # relaxed tolerance vs. the pure-f32 reference.
    assert jnp.allclose(out, ref, atol=3e-2, rtol=3e-2), "mismatch vs reference"
    assert jnp.all(jnp.abs(out) <= 1.0 + 1e-6)

    print("KERNEL_OK")
</pallas_src>

<mosaic_0001>
module attributes {stable_mosaic.version = 11 : i64} {
  func.func @_mlp_policy_kernel(%arg0: i32, %arg1: memref<16x32xf32, #tpu.memory_space<vmem>>, %arg2: memref<32x384xbf16, #tpu.memory_space<vmem>>, %arg3: memref<1x384xf32, #tpu.memory_space<vmem>>, %arg4: memref<384x256xbf16, #tpu.memory_space<vmem>>, %arg5: memref<1x256xf32, #tpu.memory_space<vmem>>, %arg6: memref<256x128xbf16, #tpu.memory_space<vmem>>, %arg7: memref<1x128xf32, #tpu.memory_space<vmem>>, %arg8: memref<16x128xbf16, #tpu.memory_space<vmem>>) attributes {dimension_semantics = [#tpu.dimension_semantics<parallel>], iteration_bounds = array<i64: 2>, scalar_prefetch = 0 : i64, scratch_operands = 0 : i64, tpu.core_type = #tpu.core_type<tc>, window_params = [{transform_indices = @transform_0, window_bounds = array<i64: 16, 32>}, {pipeline_mode = #tpu.pipeline_mode<synchronous>, transform_indices = @transform_1, window_bounds = array<i64: 32, 384>}, {pipeline_mode = #tpu.pipeline_mode<synchronous>, transform_indices = @transform_2, window_bounds = array<i64: 1, 384>}, {pipeline_mode = #tpu.pipeline_mode<synchronous>, transform_indices = @transform_3, window_bounds = array<i64: 384, 256>}, {pipeline_mode = #tpu.pipeline_mode<synchronous>, transform_indices = @transform_4, window_bounds = array<i64: 1, 256>}, {pipeline_mode = #tpu.pipeline_mode<synchronous>, transform_indices = @transform_5, window_bounds = array<i64: 256, 128>}, {pipeline_mode = #tpu.pipeline_mode<synchronous>, transform_indices = @transform_6, window_bounds = array<i64: 1, 128>}, {transform_indices = @transform_7, window_bounds = array<i64: 16, 128>}]} {
    %c0 = arith.constant 0 : index
    %c0_0 = arith.constant 0 : index
    %0 = vector.load %arg1[%c0, %c0_0] : memref<16x32xf32, #tpu.memory_space<vmem>>, vector<16x32xf32>
    %1 = arith.truncf %0 : vector<16x32xf32> to vector<16x32xbf16>
    %c0_1 = arith.constant 0 : index
    %c0_2 = arith.constant 0 : index
    %2 = vector.load %arg2[%c0_1, %c0_2] : memref<32x384xbf16, #tpu.memory_space<vmem>>, vector<32x384xbf16>
    %cst = arith.constant dense<0.000000e+00> : vector<16x384xf32>
    %3 = tpu.matmul %1, %2, %cst {dimension_numbers = #tpu.dot_dimension_numbers<[1], [0], [0], [1], [0, 0, 1, 1], [], []>} : vector<16x32xbf16>, vector<32x384xbf16>, vector<16x384xf32> -> vector<16x384xf32>
    %c0_3 = arith.constant 0 : index
    %c0_4 = arith.constant 0 : index
    %4 = vector.load %arg3[%c0_3, %c0_4] : memref<1x384xf32, #tpu.memory_space<vmem>>, vector<1x384xf32>
    %5 = vector.broadcast %4 : vector<1x384xf32> to vector<16x384xf32>
    %6 = arith.addf %3, %5 : vector<16x384xf32>
    %cst_5 = arith.constant 0.000000e+00 : f32
    %7 = vector.broadcast %cst_5 : f32 to vector<16x384xf32>
    %8 = arith.maximumf %6, %7 : vector<16x384xf32>
    %9 = arith.truncf %8 : vector<16x384xf32> to vector<16x384xbf16>
    %c0_6 = arith.constant 0 : index
    %c0_7 = arith.constant 0 : index
    %10 = vector.load %arg4[%c0_6, %c0_7] : memref<384x256xbf16, #tpu.memory_space<vmem>>, vector<384x256xbf16>
    %cst_8 = arith.constant dense<0.000000e+00> : vector<16x256xf32>
    %11 = tpu.matmul %9, %10, %cst_8 {dimension_numbers = #tpu.dot_dimension_numbers<[1], [0], [0], [1], [0, 0, 1, 1], [], []>} : vector<16x384xbf16>, vector<384x256xbf16>, vector<16x256xf32> -> vector<16x256xf32>
    %c0_9 = arith.constant 0 : index
    %c0_10 = arith.constant 0 : index
    %12 = vector.load %arg5[%c0_9, %c0_10] : memref<1x256xf32, #tpu.memory_space<vmem>>, vector<1x256xf32>
    %13 = vector.broadcast %12 : vector<1x256xf32> to vector<16x256xf32>
    %14 = arith.addf %11, %13 : vector<16x256xf32>
    %cst_11 = arith.constant 0.000000e+00 : f32
    %15 = vector.broadcast %cst_11 : f32 to vector<16x256xf32>
    %16 = arith.maximumf %14, %15 : vector<16x256xf32>
    %17 = arith.truncf %16 : vector<16x256xf32> to vector<16x256xbf16>
    %c0_12 = arith.constant 0 : index
    %c0_13 = arith.constant 0 : index
    %18 = vector.load %arg6[%c0_12, %c0_13] : memref<256x128xbf16, #tpu.memory_space<vmem>>, vector<256x128xbf16>
    %cst_14 = arith.constant dense<0.000000e+00> : vector<16x128xf32>
    %19 = tpu.matmul %17, %18, %cst_14 {dimension_numbers = #tpu.dot_dimension_numbers<[1], [0], [0], [1], [0, 0, 1, 1], [], []>} : vector<16x256xbf16>, vector<256x128xbf16>, vector<16x128xf32> -> vector<16x128xf32>
    %c0_15 = arith.constant 0 : index
    %c0_16 = arith.constant 0 : index
    %20 = vector.load %arg7[%c0_15, %c0_16] : memref<1x128xf32, #tpu.memory_space<vmem>>, vector<1x128xf32>
    %21 = vector.broadcast %20 : vector<1x128xf32> to vector<16x128xf32>
    %22 = arith.addf %19, %21 : vector<16x128xf32>
    %23 = math.tanh %22 : vector<16x128xf32>
    %24 = arith.truncf %23 : vector<16x128xf32> to vector<16x128xbf16>
    %c0_17 = arith.constant 0 : index
    %c0_18 = arith.constant 0 : index
    %25 = vector.load %arg8[%c0_17, %c0_18] : memref<16x128xbf16, #tpu.memory_space<vmem>>, vector<16x128xbf16>
    tpu.vector_store %arg8[%c0_17, %c0_18], %24 {strides = array<i32>} : memref<16x128xbf16, #tpu.memory_space<vmem>>, vector<16x128xbf16>,
    return
  }
  func.func @transform_0(%arg0: i32) -> (i32, i32) {
    %c0_i32 = arith.constant 0 : i32
    %c0_i32_0 = arith.constant 0 : i32
    return %arg0, %c0_i32 : i32, i32
  }
  func.func @transform_1(%arg0: i32) -> (i32, i32) {
    %c0_i32 = arith.constant 0 : i32
    %c0_i32_0 = arith.constant 0 : i32
    %c0_i32_1 = arith.constant 0 : i32
    return %c0_i32, %c0_i32_0 : i32, i32
  }
  func.func @transform_2(%arg0: i32) -> (i32, i32) {
    %c0_i32 = arith.constant 0 : i32
    %c0_i32_0 = arith.constant 0 : i32
    %c0_i32_1 = arith.constant 0 : i32
    return %c0_i32, %c0_i32_0 : i32, i32
  }
  func.func @transform_3(%arg0: i32) -> (i32, i32) {
    %c0_i32 = arith.constant 0 : i32
    %c0_i32_0 = arith.constant 0 : i32
    %c0_i32_1 = arith.constant 0 : i32
    return %c0_i32, %c0_i32_0 : i32, i32
  }
  func.func @transform_4(%arg0: i32) -> (i32, i32) {
    %c0_i32 = arith.constant 0 : i32
    %c0_i32_0 = arith.constant 0 : i32
    %c0_i32_1 = arith.constant 0 : i32
    return %c0_i32, %c0_i32_0 : i32, i32
  }
  func.func @transform_5(%arg0: i32) -> (i32, i32) {
    %c0_i32 = arith.constant 0 : i32
    %c0_i32_0 = arith.constant 0 : i32
    %c0_i32_1 = arith.constant 0 : i32
    return %c0_i32, %c0_i32_0 : i32, i32
  }
  func.func @transform_6(%arg0: i32) -> (i32, i32) {
    %c0_i32 = arith.constant 0 : i32
    %c0_i32_0 = arith.constant 0 : i32
    %c0_i32_1 = arith.constant 0 : i32
    return %c0_i32, %c0_i32_0 : i32, i32
  }
  func.func @transform_7(%arg0: i32) -> (i32, i32) {
    %c0_i32 = arith.constant 0 : i32
    %c0_i32_0 = arith.constant 0 : i32
    return %arg0, %c0_i32 : i32, i32
  }
}

</mosaic_0001>

<bundles_post_ra>
// kernel: tpu_custom_call.1
= control target key start
LH: loop header
LB: loop body
LE: loop exit
PB: predicated region body
PF: predicated region fallthrough
CT: control target
= control target key end

     0   :  { %s2024_s0 = inlined_call_operand.hbm [shape: f32[20,32], index: 0, kind: input, shape index: {}]   ;;  %s2025_s1 = inlined_call_operand.hbm [shape: bf16[32,384], index: 1, kind: input, shape index: {}]   ;;  %s2026_s2 = inlined_call_operand.vmem [shape: f32[1,384], index: 2, kind: input, shape index: {}]   ;;  %s2027_s3 = inlined_call_operand.hbm [shape: bf16[384,256], index: 3, kind: input, shape index: {}]   ;;  %s2028_s4 = inlined_call_operand.vmem [shape: f32[1,256], index: 4, kind: input, shape index: {}]   ;;  %s2029_s5 = inlined_call_operand.hbm [shape: bf16[256,128], index: 5, kind: input, shape index: {}]   ;;  %s2030_s6 = inlined_call_operand.vmem [shape: f32[1,128], index: 6, kind: input, shape index: {}]   ;;  %s2031_s7 = inlined_call_operand.hbm [shape: bf16[20,128], index: 7, kind: output, shape index: {}]  }
   0x1   :  { %2034 = sst [smem:[#allocation16_spill]] %s2025_s1 }
   0x2   :  { %12 = vsyncpa [#allocation3], 0 }
   0x3   :  { %14 = vsyncpa [#allocation3 + $0x1], 0 }
   0x4   :  { %15 = vsyncpa [#allocation6], 0 }
   0x5   :  { %16 = vsyncpa [#allocation9], 0 }
   0x6   :  { %17 = vsyncpa [#allocation4], 0 }
   0x7   :  { %19 = vsyncpa [#allocation4 + $0x1], 0  ;;  %s1781_s24 = smov 0   ;;  %s1783_s25 = smov 0  }
   0x8   :  { %s1785_s26 = smov 0   ;;  %s1787_s27 = smov 0  }
   0x9 LB: > { %s1802_s28 = sadd.s32 4294967295, %s1721_s27   ;;  %s1217_s29 = sadd.s32 4294967294, %s1721_s27   ;;  %s1721_s27 = sphi %s1787_s27, %s2054_s27   ;;  %s1717_s26 = sphi %s1785_s26, %s2053_s26   ;;  %s1713_s25 = sphi %s1783_s25, %s2052_s25   ;;  %s1709_s24 = sphi %s1781_s24, %s2051_s24  }
   0xa   : > { %s1806_s30 = sadd.s32 1, %s1721_s27   ;;  %s32_s8 = sadd.s32 1, %s1717_s26 }
   0xb   : > { %s29_s9 = ssub.s32 %s1721_s27, %s1806_s30  ;;  %p39_p0 = scmp.ne.s32.totalorder %s1717_s26, %s1713_s25 }
   0xc   : > { %p30_p1 = scmp.eq.s32.totalorder %s29_s9, 0  ;;  %p40_p2 = scmp.eq.s32.totalorder %s1721_s27, 0 }
   0xd   : > { %p45_p3 = scmp.ne.s32.totalorder %s1713_s25, %s1709_s24  ;;  %p2032_p4 = scmp.eq.s32.totalorder %s1802_s28, 0 }
   0xe   : > { %s1818_s10 = scalar_select %p30_p1, %s1717_s26, %s32_s8  }
   0xf   : > { %p1820_p5 = por %p40_p2, %p39_p0  ;;  %p1826_p6 = por %p2032_p4, %p45_p3 }
  0x10   : > { %2035 = sst [smem:[#allocation15_spill]] %s1818_s10  ;;  %p195_p7 = scmp.eq.s32.totalorder %s1802_s28, 1 }
  0x11   : > { %s2037_s12 = scalar_select %p1826_p6, 1, 0 }
  0x12   : > { %p201_p8 = scmp.eq.s32.totalorder %s1217_s29, 1  ;;  %p1218_p9 = scmp.ge.s32.totalorder %s1721_s27, 1 }
  0x13   : > { %p208_p10 = scmp.lt.s32.totalorder %s1721_s27, 3  ;;  %p1833_p11 = por %p195_p7, %p39_p0 }
  0x14   : > { %p1837_p12 = por %p201_p8, %p45_p3  ;;  %s1723_s16 = smov [#allocation5]  }
  0x15   : > { %s2038_s13 = scalar_select %p1833_p11, 1, 0 }
  0x16   : > { %s2039_s14 = scalar_select %p1837_p12, 1, 0 }
  0x17   : > { %p1841_p13 = pnand %p1218_p9, %p208_p10  ;;  %s220_s17 = sshll.u32 %s1723_s16, 4  ;;  %s221_s17 = int_to_ptr.vmem [resolvable:$true] %s220_s17 }
  0x18   : > { %s1724_s19 = smov [#allocation7]   ;;  %s1556_s21 = scalar_lea.vmem %s221_s17, 768 }
  0x19   : > { %p1376_p1 = pneg %p1841_p13  ;;  %s236_s20 = sshll.u32 %s1724_s19, 4  ;;  %s237_s20 = int_to_ptr.vmem [resolvable:$true] %s236_s20 }
  0x1a   : > { %p1557_p3 = scmp.ne.s32.totalorder %s221_s17, %s1556_s21  ;;  %p1564_p9 = scmp.lt.s32.totalorder %s221_s17, %s221_s17 }
  0x1b   : > { %p1849_p2 = pnand %p1376_p1, %p2032_p4  ;;  %p1565_p10 = scmp.lt.s32.totalorder %s1556_s21, %s1556_s21 }
  0x1d   : > { %p1547_p0 = pneg %p1849_p2  ;;  %p1566_p12 = por %p1565_p10, %p1564_p9 }
  0x1f   : > { %p1559_p7 = pnand %p1557_p3, %p1547_p0 }
  0x21   : > { %p1560_p8 = pneg %p1559_p7 }
  0x23   : > { %p1567_p1 = pnand %p1566_p12, %p1560_p8 }
  0x25   : > { %1570 = shalt.err (!%p1567_p1)
}
  0x26   : > { %s1725_s22 = smov 192   ;;  %s1726_s23 = smov 12  }
  0x27   : > { %s2042_s1 = sld [smem:[#allocation16_spill]]  ;;  %s1582_s9 = scalar_lea.vmem %s237_s20, 6144 }
  0x28   : > { %p1583_p4 = scmp.ne.s32.totalorder %s237_s20, %s1582_s9  ;;  %p1590_p11 = scmp.lt.s32.totalorder %s237_s20, %s237_s20 }
  0x29   : > { %p1591_p6 = scmp.lt.s32.totalorder %s1582_s9, %s1582_s9 }
  0x2a   : > { %p1585_p3 = pnand %p1583_p4, %p1547_p0 }
  0x2b   : > { %p1592_p9 = por %p1591_p6, %p1590_p11 }
  0x2c   : > { %p1586_p7 = pneg %p1585_p3 }
  0x2d   : > { %1379 = dma.hbm_to_vmem [thread:$0]  (!%p1849_p2), %s2042_s1, 768, %s221_s17, [#allocation6], %s1725_s22, %s1725_s22, %s1726_s23  }
  0x2e   : > { %p1593_p12 = pnand %p1592_p9, %p1586_p7 }
  0x30   : > { %1596 = shalt.err (!%p1593_p12)
}
  0x31   : > { %s1727_s16 = smov 128   ;;  %s1728_s19 = smov 8  }
  0x32   : > { %1382 = dma.hbm_to_vmem [thread:$0]  (!%p1849_p2), %s2027_s3, 6144, %s237_s20, [#allocation6], %s1727_s16, %s1727_s16, %s1728_s19  }
  0x33   : > { %s1729_s17 = smov [#allocation8]  }
  0x34   : > { %s252_s22 = sshll.u32 %s1729_s17, 4  ;;  %s253_s22 = int_to_ptr.vmem [resolvable:$true] %s252_s22 }
  0x35   : > { %s1608_s23 = scalar_lea.vmem %s253_s22, 2048  ;;  %p1616_p11 = scmp.lt.s32.totalorder %s253_s22, %s253_s22 }
  0x36   : > { %p1609_p4 = scmp.ne.s32.totalorder %s253_s22, %s1608_s23  ;;  %p1617_p10 = scmp.lt.s32.totalorder %s1608_s23, %s1608_s23 }
  0x38   : > { %p1611_p8 = pnand %p1609_p4, %p1547_p0  ;;  %p1618_p1 = por %p1617_p10, %p1616_p11 }
  0x3a   : > { %p1612_p6 = pneg %p1611_p8 }
  0x3c   : > { %p1619_p3 = pnand %p1618_p1, %p1612_p6 }
  0x3e   : > { %1622 = shalt.err (!%p1619_p3)
}
  0x3f   : > { %s1730_s29 = smov 64   ;;  %s1731_s8 = smov 4  }
  0x40   : > { %1385 = dma.hbm_to_vmem [thread:$0]  (!%p1849_p2), %s2029_s5, 2048, %s253_s22, [#allocation9], %s1730_s29, %s1730_s29, %s1731_s8  }
  0x41   : > { %p1222_p7 = scmp.ge.s32.totalorder %s1721_s27, 2 }
  0x43   : > { %265 = sbr.rel (%p1222_p7) target bundleno = 104 (0x68), region = 40 }
  0x48   : > { %268 = sbr.rel (!%p1820_p5) target bundleno = 104 (0x68), region = 44  ;;  %s269_s9 = sand.u32 (%p1820_p5), 1, %s1717_s26  }
  0x49   : > { %s1224_s16 = sshll.u32 (%p1820_p5), %s1721_s27, 1  ;;  %s1223_s19 = sshll.u32 (%p1820_p5), %s269_s9, 4 }
  0x4a   : > { %s275_s21 = ssub.s32 (%p1820_p5), 3, %s1224_s16  ;;  %s1889_s22 = scalar_lea.sflag (%p1820_p5), [#allocation3], %s269_s9 }
  0x4b   : > { %p276_p0 = scmp.lt.s32.totalorder (%p1820_p5), %s275_s21, 2  ;;  %s273_s23 = scalar_lea.vmem (%p1820_p5), [#allocation2], %s1223_s19 }
  0x4d   : > { %s2056_s21 = smov (!%p276_p0, %s275_s21), 2 }
  0x4e   : > { %s1886_s18 = sshll.u32 %s2056_s21, 7 }
  0x4f   : > { %s280_s17 = ssub.s32 256, %s1886_s18 }
  0x50   : > { %281 = vsyncadd %s1889_s22, %s280_s17  ;;  %p1226_p5 = scmp.ne.s32.totalorder %s1886_s18, 0  ;;  %s1320_s11 = sshll.u32 %s1721_s27, 8 }
  0x51   : > { %s1897_s10 = scalar_lea.hbm %s2024_s0, %s1320_s11  ;;  %s286_s20 = sshll.u32 %s273_s23, 4  ;;  %s1899_s20 = int_to_ptr.vmem [resolvable:$true] %s286_s20 }
  0x52   : > { %s1623_s9 = scalar_lea.hbm %s1897_s10, %s1886_s18  ;;  %s1627_s21 = scalar_lea.hbm %s2024_s0, 384 }
  0x53   : > { %p1624_p2 = scmp.ne.s32.totalorder %s1897_s10, %s1623_s9  ;;  %p1628_p4 = scmp.lt.s32.totalorder %s1897_s10, %s2024_s0 }
  0x54   : > { %p1629_p8 = scmp.lt.s32.totalorder %s1627_s21, %s1623_s9 }
  0x55   : > { %p1625_p9 = pnand %p1624_p2, %p1226_p5 }
  0x56   : > { %p1630_p6 = por %p1629_p8, %p1628_p4 }
  0x57   : > { %p1626_p12 = pneg %p1625_p9 }
  0x59   : > { %p1631_p11 = pnand %p1630_p6, %p1626_p12 }
  0x5b   : > { %1634 = shalt.err (!%p1631_p11)
}
  0x5c   : > { %s1635_s23 = scalar_lea.vmem %s1899_s20, %s1886_s18  ;;  %s1732_s11 = smov [#allocation2]  }
  0x5d   : > { %p1636_p10 = scmp.ne.s32.totalorder %s1899_s20, %s1635_s23  ;;  %s1639_s29 = sshll.u32 %s1732_s11, 4  ;;  %s1640_s29 = int_to_ptr.vmem [resolvable:$false] %s1639_s29 }
  0x5e   : > { %s1641_s8 = scalar_lea.vmem %s1640_s29, 512  ;;  %p1642_p0 = scmp.lt.s32.totalorder %s1899_s20, %s1640_s29 }
  0x5f   : > { %p1637_p1 = pnand %p1636_p10, %p1226_p5  ;;  %p1643_p2 = scmp.lt.s32.totalorder %s1641_s8, %s1635_s23 }
  0x61   : > { %p1638_p3 = pneg %p1637_p1  ;;  %p1644_p9 = por %p1643_p2, %p1642_p0 }
  0x63   : > { %p1645_p4 = pnand %p1644_p9, %p1638_p3 }
  0x65   : > { %1648 = shalt.err (!%p1645_p4)
}
  0x66   : > { %s1733_s1 = smov 128   ;;  %s1734_s9 = smov 8  }
  0x67   : > { %292 = dma.hbm_to_vmem [thread:$0]  (%p1226_p5), %s1897_s10, %s1886_s18, %s1899_s20, %s1889_s22, %s1733_s1, %s1733_s1, %s1734_s9  }
  0x68 PF: > { %298 = sbr.rel (%p1841_p13) target bundleno = 787 (0x313), region = 48  ;;  %s1928_s16 = sand.u32 (!%p1841_p13), 1, %s1713_s25  }
  0x69   : > { %s1231_s19 = sshll.u32 (!%p1841_p13), %s1928_s16, 4  ;;  %s301_s21 = scalar_lea.sflag (!%p1841_p13), [#allocation3], %s1928_s16 }
  0x6a   : > { %s304_s17 = scalar_lea.vmem (!%p1841_p13), [#allocation2], %s1231_s19  ;;  %p2043_p12 = scmp.ne.s32.totalorder (!%p1841_p13), %s2037_s12, 0 }
  0x6d   : > { %1692 = dma.done.wait (%p2043_p12), %s301_s21, 256  }
  0x6e   : > { %1694 = vsyncadd (%p2043_p12), %s301_s21, 4294967040  ;;  %p2044_p5 = scmp.eq.s32.totalorder %s1802_s28, 0 }
  0x70   : > { %1696 = dma.done.wait (%p2044_p5), [#allocation6], 6912   ;;  %p2045_p8 = pmov %p2044_p5 }
  0x71   : > { %p2046_p13 = pmov %p2044_p5 }
  0x72   : > { %1698 = vsyncadd (%p2045_p8), [#allocation6], 4294960384 }
  0x73   : > { %1700 = dma.done.wait (%p2046_p13), [#allocation9], 2048   ;;  %p2047_p6 = pmov %p2044_p5 }
  0x74   : > { %v1735_v0 = vmov 0.0   ;;  %vm1736_vm0 = vmmov 0   ;;  %v1737_v1 = vmov 0   ;;  %v1445_v2 = vld [vmem:[#allocation5 + $0x1c] ss:$12 sps:$4 sm:$0xff]   ;;  %v358_v8 = vld [vmem:[%s304_s17] sm:$0xff]  ;;  %v371_v60 = vlaneseq }
  0x75   : > { %1702 = vsyncadd (%p2047_p6), [#allocation9], 4294965248  ;;  %1354 = vmatprep.subr.bf16.mxu1 %v1735_v0  ;;  %1358 = vmatprep.mubr.msk.bf16.mxu1 %vm1736_vm0, %v1735_v0  ;;  %v1447_v3 = vld [vmem:[#allocation5 + $0x20] ss:$12 sps:$4 sm:$0xff]   ;;  %v1448_v4 = vld [vmem:[#allocation5 + $0x18] ss:$12 sps:$4 sm:$0xff]  }
  0x76   : > { %454 = vmatprep.mubr.bf16.mxu0 %v1737_v1  ;;  %434 = vmatprep.subr.bf16.mxu0 %v1445_v2  ;;  %v1449_v5 = vld [vmem:[#allocation5 + $0x4] ss:$12 sps:$4 sm:$0xff]   ;;  %v1451_v6 = vld [vmem:[#allocation5 + $0x8] ss:$12 sps:$4 sm:$0xff]   ;;  %v1452_v7 = vld [vmem:[#allocation5] ss:$12 sps:$4 sm:$0xff]  }
  0x77   : > { %1355 = vmatpush3.bf16.msra.mxu1 %v1447_v3  ;;  %435 = vmatpush1.bf16.msra.mxu0 %v1448_v4  ;;  %v359_v9 = vld [vmem:[%s304_s17 + $0x8] sm:$0xff]  ;;  %vm418_vm1 = vcmask 261120   ;;  %v1944_v61 = vshrl.u32 %v371_v60, 7  ;;  %v369_v63 = vld [vmem:[%s2026_s2] sm:$0x7]  ;;  %s1235_s23 = sshll.u32 %s1928_s16, 3 }
  0x78   : > { %1356 = vmatprep.subr.bf16.mxu1 %v1735_v0  ;;  %436 = vmatprep.subr.bf16.mxu0 %v1449_v5  ;;  %v360_v10 = vpack.c.bf16 %v359_v9, %v358_v8  ;;  %v1455_v11 = vld [vmem:[#allocation7 + $0x74] ss:$8 sps:$4 sm:$0xff]   ;;  %v1453_v12 = vld [vmem:[#allocation7 + $0x70] ss:$8 sps:$4 sm:$0xff]   ;;  %v1458_v13 = vld [vmem:[#allocation7 + $0x64] ss:$8 sps:$4 sm:$0xff]  }
  0x79   : > { %v1456_v14 = vld [vmem:[#allocation7 + $0x60] ss:$8 sps:$4 sm:$0xff]   ;;  %v1461_v15 = vld [vmem:[#allocation7 + $0x54] ss:$8 sps:$4 sm:$0xff]   ;;  %v1459_v16 = vld [vmem:[#allocation7 + $0x50] ss:$8 sps:$4 sm:$0xff]  }
  0x7a   : > { %v1464_v17 = vld [vmem:[#allocation7 + $0x44] ss:$8 sps:$4 sm:$0xff]   ;;  %v1477_v18 = vld [vmem:[#allocation7 + $0x170] ss:$8 sps:$4 sm:$0xff]   ;;  %v1479_v19 = vld [vmem:[#allocation7 + $0x174] ss:$8 sps:$4 sm:$0xff]  }
  0x7b   : > { %1357 = vmatpush3.bf16.msra.mxu1 %v1451_v6  ;;  %437 = vmatpush1.bf16.msra.mxu0 %v1452_v7  ;;  %v1462_v20 = vld [vmem:[#allocation7 + $0x40] ss:$8 sps:$4 sm:$0xff]   ;;  %v1485_v21 = vld [vmem:[#allocation7 + $0x164] ss:$8 sps:$4 sm:$0xff]   ;;  %v1467_v23 = vld [vmem:[#allocation7 + $0x34] ss:$8 sps:$4 sm:$0xff]  }
  0x7c   : > { %815 = vmatprep.subr.bf16.mxu0 %v1455_v11  ;;  %858 = vmatprep.subr.bf16.mxu1 %v1479_v19  ;;  %v1483_v22 = vld [vmem:[#allocation7 + $0x160] ss:$8 sps:$4 sm:$0xff]   ;;  %v1491_v24 = vld [vmem:[#allocation7 + $0x154] ss:$8 sps:$4 sm:$0xff]   ;;  %v1465_v25 = vld [vmem:[#allocation7 + $0x30] ss:$8 sps:$4 sm:$0xff]  }
  0x7d   : > { %v1470_v26 = vld [vmem:[#allocation7 + $0x24] ss:$8 sps:$4 sm:$0xff]   ;;  %v1489_v27 = vld [vmem:[#allocation7 + $0x150] ss:$8 sps:$4 sm:$0xff]   ;;  %v1468_v29 = vld [vmem:[#allocation7 + $0x20] ss:$8 sps:$4 sm:$0xff]  }
  0x7e   : > { %1359 = vmatmul.mubr.msk.bf16.vlgmr.msra.gmra.mxu1 %vm418_vm1, %v360_v10  ;;  %1242 = vmatmul.mubr.msk.bf16.vlgmr.msra.gmra.mxu0 %vm418_vm1, %v360_v10  ;;  %v1497_v28 = vld [vmem:[#allocation7 + $0x144] ss:$8 sps:$4 sm:$0xff]   ;;  %v1473_v30 = vld [vmem:[#allocation7 + $0x14] ss:$8 sps:$4 sm:$0xff]   ;;  %v1495_v31 = vld [vmem:[#allocation7 + $0x140] ss:$8 sps:$4 sm:$0xff]  }
  0x7f   : > { %890 = vmatprep.mubr.bf16.mxu1 %v1737_v1  ;;  %816 = vmatpush1.bf16.msra.mxu0 %v1453_v12  ;;  %v1503_v32 = vld [vmem:[#allocation7 + $0x134] ss:$8 sps:$4 sm:$0xff]   ;;  %v1471_v33 = vld [vmem:[#allocation7 + $0x10] ss:$8 sps:$4 sm:$0xff]   ;;  %v1476_v35 = vld [vmem:[#allocation7 + $0x4] ss:$8 sps:$4 sm:$0xff]  }
  0x80   : > { %817 = vmatprep.subr.bf16.mxu0 %v1458_v13  ;;  %859 = vmatpush1.bf16.msra.mxu1 %v1477_v18  ;;  %v1501_v34 = vld [vmem:[#allocation7 + $0x130] ss:$8 sps:$4 sm:$0xff]   ;;  %v1509_v36 = vld [vmem:[#allocation7 + $0x124] ss:$8 sps:$4 sm:$0xff]   ;;  %v1474_v37 = vld [vmem:[#allocation7] ss:$8 sps:$4 sm:$0xff]  }
  0x81   : > { %860 = vmatprep.subr.bf16.mxu1 %v1485_v21  ;;  %v1507_v38 = vld [vmem:[#allocation7 + $0x120] ss:$8 sps:$4 sm:$0xff]   ;;  %v1482_v39 = vld [vmem:[#allocation7 + $0xf4] ss:$8 sps:$4 sm:$0xff]   ;;  %v1480_v40 = vld [vmem:[#allocation7 + $0xf0] ss:$8 sps:$4 sm:$0xff]  }
  0x82   : > { %v1488_v41 = vld [vmem:[#allocation7 + $0xe4] ss:$8 sps:$4 sm:$0xff]   ;;  %v1486_v42 = vld [vmem:[#allocation7 + $0xe0] ss:$8 sps:$4 sm:$0xff]   ;;  %v1494_v43 = vld [vmem:[#allocation7 + $0xd4] ss:$8 sps:$4 sm:$0xff]  }
  0x83   : > { %818 = vmatpush1.bf16.msra.mxu0 %v1456_v14  ;;  %v1492_v44 = vld [vmem:[#allocation7 + $0xd0] ss:$8 sps:$4 sm:$0xff]   ;;  %v1500_v45 = vld [vmem:[#allocation7 + $0xc4] ss:$8 sps:$4 sm:$0xff]   ;;  %v1498_v46 = vld [vmem:[#allocation7 + $0xc0] ss:$8 sps:$4 sm:$0xff]  }
  0x84   : > { %819 = vmatprep.subr.bf16.mxu0 %v1461_v15  ;;  %861 = vmatpush1.bf16.msra.mxu1 %v1483_v22  ;;  %v1506_v47 = vld [vmem:[#allocation7 + $0xb4] ss:$8 sps:$4 sm:$0xff]   ;;  %v1504_v48 = vld [vmem:[#allocation7 + $0xb0] ss:$8 sps:$4 sm:$0xff]   ;;  %v1512_v49 = vld [vmem:[#allocation7 + $0xa4] ss:$8 sps:$4 sm:$0xff]  }
  0x85   : > { %862 = vmatprep.subr.bf16.mxu1 %v1491_v24  ;;  %v1515_v50 = vld [vmem:[#allocation7 + $0x114] ss:$8 sps:$4 sm:$0xff]   ;;  %v1510_v51 = vld [vmem:[#allocation7 + $0xa0] ss:$8 sps:$4 sm:$0xff]   ;;  %v1513_v52 = vld [vmem:[#allocation7 + $0x110] ss:$8 sps:$4 sm:$0xff]  }
  0x86   : > { %v1518_v53 = vld [vmem:[#allocation7 + $0x94] ss:$8 sps:$4 sm:$0xff]   ;;  %v1521_v54 = vld [vmem:[#allocation7 + $0x104] ss:$8 sps:$4 sm:$0xff]   ;;  %v1516_v55 = vld [vmem:[#allocation7 + $0x90] ss:$8 sps:$4 sm:$0xff]  }
  0x87   : > { %820 = vmatpush1.bf16.msra.mxu0 %v1459_v16  ;;  %v1519_v56 = vld [vmem:[#allocation7 + $0x100] ss:$8 sps:$4 sm:$0xff]   ;;  %v1524_v57 = vld [vmem:[#allocation7 + $0x84] ss:$8 sps:$4 sm:$0xff]   ;;  %v1525_v59 = vld [vmem:[#allocation8 + $0x78] sm:$0xff]   ;;  %v381_v62 = vsub.s32 2, %v1944_v61 }
  0x88   : > { %821 = vmatprep.subr.bf16.mxu0 %v1464_v17  ;;  %863 = vmatpush1.bf16.msra.mxu1 %v1489_v27  ;;  %v1522_v58 = vld [vmem:[#allocation7 + $0x80] ss:$8 sps:$4 sm:$0xff]   ;;  %v377_v1 = vsub.s32 1, %v1944_v61  ;;  %v373_v2 = vsub.s32 0, %v1944_v61  ;;  %v1526_v21 = vld [vmem:[#allocation8 + $0x38] sm:$0xff]   ;;  %v1527_v24 = vld [vmem:[#allocation8 + $0x70] sm:$0xff]  }
  0x89   : > { %864 = vmatprep.subr.bf16.mxu1 %v1497_v28  ;;  %v382_v0 = vrot.slane %v369_v63, %v381_v62  ;;  %s346_s11 = scalar_lea.vmem [#allocation10], %s1235_s23  ;;  %s1096_s29 = scalar_lea.sflag [#allocation4], %s1928_s16 }
  0x8a   : > { %v378_v7 = vrot.slane %v369_v63, %v377_v1  ;;  %v374_v8 = vrot.slane %v369_v63, %v373_v2  ;;  %p2048_p11 = scmp.ne.s32.totalorder %s2038_s13, 0 }
  0x8b   : > { %822 = vmatpush1.bf16.msra.mxu0 %v1462_v20  ;;  %s1312_s8 = sshll.u32 (%p2048_p11), %s1802_s28, 1 }
  0x8c   : > { %823 = vmatprep.subr.bf16.mxu0 %v1467_v23  ;;  %865 = vmatpush1.bf16.msra.mxu1 %v1495_v31  ;;  %v1529_v31 = vld [vmem:[#allocation8 + $0x68] sm:$0xff]   ;;  %s1104_s1 = ssub.s32 (%p2048_p11), 3, %s1312_s8 }
  0x8d   : > { %866 = vmatprep.subr.bf16.mxu1 %v1503_v32  ;;  %v1530_v32 = vld [vmem:[#allocation8 + $0x28] sm:$0xff]   ;;  %p1105_p10 = scmp.lt.s32.totalorder (%p2048_p11), %s1104_s1, 2 }
  0x8f   : > { %824 = vmatpush1.bf16.msra.mxu0 %v1465_v25 }
  0x90   : > { %825 = vmatprep.subr.bf16.mxu0 %v1470_v26  ;;  %867 = vmatpush1.bf16.msra.mxu1 %v1501_v34  ;;  %v1532_v34 = vld [vmem:[#allocation8 + $0x20] sm:$0xff]  }
  0x91   : > { %868 = vmatprep.subr.bf16.mxu1 %v1509_v36  ;;  %v1534_v36 = vld [vmem:[#allocation8 + $0x18] sm:$0xff]  }
  0x93   : > { %826 = vmatpush1.bf16.msra.mxu0 %v1468_v29  ;;  %v1528_v29 = vld [vmem:[#allocation8 + $0x30] sm:$0xff]  }
  0x94   : > { %827 = vmatprep.subr.bf16.mxu0 %v1473_v30  ;;  %869 = vmatpush1.bf16.msra.mxu1 %v1507_v38  ;;  %v1536_v38 = vld [vmem:[#allocation8 + $0x10] sm:$0xff]  }
  0x95   : > { %870 = vmatprep.subr.bf16.mxu1 %v1515_v50 }
  0x97   : > { %828 = vmatpush1.bf16.msra.mxu0 %v1471_v33  ;;  %v1531_v33 = vld [vmem:[#allocation8 + $0x60] sm:$0xff]  }
  0x98   : > { %829 = vmatprep.subr.bf16.mxu0 %v1476_v35  ;;  %871 = vmatpush1.bf16.msra.mxu1 %v1513_v52  ;;  %v1533_v35 = vld [vmem:[#allocation8 + $0x58] sm:$0xff]  }
  0x99   : > { %872 = vmatprep.subr.bf16.mxu1 %v1521_v54 }
  0x9b   : > { %830 = vmatpush1.bf16.msra.mxu0 %v1474_v37  ;;  %v1535_v37 = vld [vmem:[#allocation8 + $0x50] sm:$0xff]  }
  0x9c   : > { %831 = vmatprep.subr.bf16.mxu0 %v1482_v39  ;;  %873 = vmatpush1.bf16.msra.mxu1 %v1519_v56  ;;  %v1537_v39 = vld [vmem:[#allocation8 + $0x48] sm:$0xff]  }
  0x9d   : > { %1332 = vmatprep.subr.bf16.mxu1 %v1525_v59 }
  0x9f   : > { %832 = vmatpush2.bf16.msra.mxu0 %v1480_v40  ;;  %v1538_v40 = vld [vmem:[#allocation8 + $0x8] sm:$0xff]  }
  0xa0   : > { %833 = vmatprep.subr.bf16.mxu0 %v1488_v41  ;;  %v1539_v41 = vld [vmem:[#allocation8 + $0x40] sm:$0xff]  }
  0xa3   : > { %834 = vmatpush2.bf16.msra.mxu0 %v1486_v42  ;;  %v1540_v42 = vld [vmem:[#allocation8] sm:$0xff]  }
  0xa4   : > { %835 = vmatprep.subr.bf16.mxu0 %v1494_v43 }
  0xa7   : > { %836 = vmatpush2.bf16.msra.mxu0 %v1492_v44  ;;  %v563_v44 = vld [vmem:[%s2028_s4] sm:$0x3] }
  0xa8   : > { %837 = vmatprep.subr.bf16.mxu0 %v1500_v45  ;;  %v572_v45 = vrot.slane %v563_v44, %v377_v1 }
  0xab   : > { %838 = vmatpush2.bf16.msra.mxu0 %v1498_v46 }
  0xac   : > { %839 = vmatprep.subr.bf16.mxu0 %v1506_v47  ;;  %v568_v47 = vrot.slane %v563_v44, %v373_v2 }
  0xaf   : > { %840 = vmatpush2.bf16.msra.mxu0 %v1504_v48 }
  0xb0   : > { %841 = vmatprep.subr.bf16.mxu0 %v1512_v49 }
  0xb3   : > { %842 = vmatpush2.bf16.msra.mxu0 %v1510_v51 }
  0xb4   : > { %843 = vmatprep.subr.bf16.mxu0 %v1518_v53 }
  0xb7   : > { %844 = vmatpush2.bf16.msra.mxu0 %v1516_v55 }
  0xb8   : > { %845 = vmatprep.subr.bf16.mxu0 %v1524_v57 }
  0xbb   : > { %846 = vmatpush2.bf16.msra.mxu0 %v1522_v58 }
 0x13e   : > { %v499_v3 = vpop.f32.mrf.mxu1  ;;  %v456_v5 = vpop.f32.mrf.mxu0 }
 0x13f   : > { %v500_v4 = vadd.f32 %v499_v3, %v382_v0  ;;  %v457_v17 = vadd.f32 %v456_v5, %v374_v8 }
 0x140   : > { %v1360_v6 = vpop.f32.mrf.mxu1  ;;  %v458_v9 = vpop.f32.mrf.mxu0 }
 0x141   : > { %v508_v11 = vmax.f32 %v500_v4, 0.0  ;;  %v459_v14 = vadd.f32 %v458_v9, %v378_v7  ;;  %v506_v27 = vmax.f32 %v457_v17, 0.0  ;;  %v1292_v6 = vld [vmem:[%s2030_s6] ss:$0 sm:$0xff] }
 0x142   : > { %v502_v10 = vpop.f32.mrf.mxu1  ;;  %v460_v13 = vpop.f32.mrf.mxu0 }
 0x143   : > { %v503_v12 = vadd.f32 %v502_v10, %v382_v0  ;;  %v461_v15 = vadd.f32 %v460_v13, %v374_v8  ;;  %v507_v25 = vmax.f32 %v459_v14, 0.0 }
 0x144   : > { %v1361_v16 = vpop.f32.mrf.mxu1  ;;  %v462_v19 = vpop.f32.mrf.mxu0 }
 0x145   : > { %v511_v18 = vmax.f32 %v503_v12, 0.0  ;;  %v463_v20 = vadd.f32 %v462_v19, %v378_v7  ;;  %v509_v23 = vmax.f32 %v461_v15, 0.0 }
 0x147   : > { %v514_v22 = vpack.c.bf16 %v511_v18, %v508_v11  ;;  %v510_v26 = vmax.f32 %v463_v20, 0.0  ;;  %v512_v30 = vpack.c.bf16 %v509_v23, %v506_v27 }
 0x149   : > { %891 = vmatmul.mubr.bf16.vlgmr.msra.gmra.mxu1 %v514_v22  ;;  %v513_v28 = vpack.c.bf16 %v510_v26, %v507_v25 }
 0x14a   : > { %1333 = vmatpush3.bf16.msra.mxu1 %v1526_v21 }
 0x14b   : > { %1334 = vmatprep.subr.bf16.mxu1 %v1527_v24  ;;  %847 = vmatprep.mubr.bf16.mxu0 %v513_v28 }
 0x14c   : > { %848 = vmatmul.mubr.bf16.vlgmr.msra.gmra.mxu0 %v512_v30 }
 0x14e   : > { %1335 = vmatpush3.bf16.msra.mxu1 %v1528_v29 }
 0x14f   : > { %1336 = vmatprep.subr.bf16.mxu1 %v1529_v31 }
 0x152   : > { %1337 = vmatpush3.bf16.msra.mxu1 %v1530_v32 }
 0x153   : > { %1338 = vmatprep.subr.bf16.mxu1 %v1531_v33 }
 0x156   : > { %1339 = vmatpush3.bf16.msra.mxu1 %v1532_v34 }
 0x157   : > { %1340 = vmatprep.subr.bf16.mxu1 %v1533_v35 }
 0x15a   : > { %1341 = vmatpush3.bf16.msra.mxu1 %v1534_v36 }
 0x15b   : > { %1342 = vmatprep.subr.bf16.mxu1 %v1535_v37 }
 0x15e   : > { %1343 = vmatpush3.bf16.msra.mxu1 %v1536_v38 }
 0x15f   : > { %1344 = vmatprep.subr.bf16.mxu1 %v1537_v39 }
 0x162   : > { %1345 = vmatpush3.bf16.msra.mxu1 %v1538_v40 }
 0x163   : > { %1346 = vmatprep.subr.bf16.mxu1 %v1539_v41 }
 0x166   : > { %1347 = vmatpush3.bf16.msra.mxu1 %v1540_v42 }
 0x209   : > { %v892_v43 = vpop.f32.mrf.mxu1 }
 0x20b   : > { %v894_v46 = vpop.f32.mrf.mxu1 }
 0x20c   : > { %v849_v48 = vpop.f32.mrf.mxu0 }
 0x20d   : > { %v850_v51 = vadd.f32 %v849_v48, %v568_v47  ;;  %v896_v52 = vpop.f32.mrf.mxu1 }
 0x20e   : > { %v851_v49 = vpop.f32.mrf.mxu0 }
 0x20f   : > { %v852_v50 = vadd.f32 %v851_v49, %v572_v45  ;;  %v893_v59 = vadd.f32 %v892_v43, %v850_v51  ;;  %v898_v60 = vpop.f32.mrf.mxu1 }
 0x210   : > { %v853_v53 = vpop.f32.mrf.mxu0 }
 0x211   : > { %v854_v54 = vadd.f32 %v853_v53, %v568_v47  ;;  %v895_v56 = vadd.f32 %v894_v46, %v852_v50  ;;  %v901_v3 = vmax.f32 %v893_v59, 0.0 }
 0x212   : > { %v855_v55 = vpop.f32.mrf.mxu0 }
 0x213   : > { %v897_v57 = vadd.f32 %v896_v52, %v854_v54  ;;  %v856_v58 = vadd.f32 %v855_v55, %v572_v45  ;;  %v902_v0 = vmax.f32 %v895_v56, 0.0 }
 0x215   : > { %v899_v62 = vadd.f32 %v898_v60, %v856_v58  ;;  %v903_v63 = vmax.f32 %v897_v57, 0.0 }
 0x217   : > { %v904_v1 = vmax.f32 %v899_v62, 0.0  ;;  %v905_v2 = vpack.c.bf16 %v903_v63, %v901_v3 }
 0x219   : > { %v906_v61 = vpack.c.bf16 %v904_v1, %v902_v0 }
 0x21b   : > { %1074 = vmatprep.mubr.bf16.mxu1 %v906_v61 }
 0x21c   : > { %1075 = vmatmul.mubr.bf16.vlgmr.msra.gmra.mxu1 %v905_v2 }
 0x2dc   : > { %v1348_v4 = vpop.f32.mrf.mxu1 }
 0x2de   : > { %v1349_v5 = vpop.f32.mrf.mxu1 }
 0x2df   : > { %v1350_v7 = vadd.f32 %v1349_v5, %v1348_v4 }
 0x2e0   : > { %v1351_v8 = vpop.f32.mrf.mxu1 }
 0x2e1   : > { %v1077_v9 = vadd.f32 %v1350_v7, %v1292_v6 }
 0x2e2   : > { %v1352_v10 = vpop.f32.mrf.mxu1 }
 0x2e3   : > { %v1353_v11 = vadd.f32 %v1352_v10, %v1351_v8  ;;  %1541 = vtanh.f32 %v1077_v9 }
 0x2e5   : > { %v1080_v12 = vadd.f32 %v1353_v11, %v1292_v6 }
 0x2e7   : > { %1543 = vtanh.f32 %v1080_v12 }
 0x2f0   : > { %v1542_v13 = vpop.eup %1541 }
 0x2f3   : > { %1102 = sbr.rel (!%p2048_p11) target bundleno = 787 (0x313), region = 68 }
 0x2f4   : > { %v1544_v14 = vpop.eup %1543 }
 0x2f5   : > { %v1327_v15 = vpack.c.bf16 %v1544_v14, %v1542_v13 }
 0x2f7   : > { %1328 = vst [vmem:[%s346_s11] sm:$0xff] %v1327_v15  }
 0x2f8   : > { %s2058_s1 = smov (!%p1105_p10, %s1104_s1), 2 }
 0x2f9   : > { %s1967_s9 = sshll.u32 %s2058_s1, 6 }
 0x2fa   : > { %s1109_s19 = ssub.s32 128, %s1967_s9 }
 0x2fb   : > { %1110 = vsyncadd %s1096_s29, %s1109_s19  ;;  %p1314_p1 = scmp.ne.s32.totalorder %s1967_s9, 0  ;;  %s1323_s21 = sshll.u32 %s1802_s28, 7 }
 0x2fc   : > { %s1977_s12 = scalar_lea.hbm %s2031_s7, %s1323_s21  ;;  %s1115_s15 = sshll.u32 %s346_s11, 4  ;;  %s1979_s15 = int_to_ptr.vmem [resolvable:$true] %s1115_s15 }
 0x2fd   : > { %s1649_s18 = scalar_lea.vmem %s1979_s15, %s1967_s9  ;;  %s1738_s22 = smov [#allocation10]  }
 0x2fe   : > { %p1650_p3 = scmp.ne.s32.totalorder %s1979_s15, %s1649_s18  ;;  %s1653_s10 = sshll.u32 %s1738_s22, 4  ;;  %s1654_s10 = int_to_ptr.vmem [resolvable:$false] %s1653_s10 }
 0x2ff   : > { %s1655_s28 = scalar_lea.vmem %s1654_s10, 256  ;;  %p1656_p9 = scmp.lt.s32.totalorder %s1979_s15, %s1654_s10 }
 0x300   : > { %p1651_p0 = pnand %p1650_p3, %p1314_p1  ;;  %p1657_p4 = scmp.lt.s32.totalorder %s1655_s28, %s1649_s18 }
 0x302   : > { %p1652_p2 = pneg %p1651_p0  ;;  %p1658_p12 = por %p1657_p4, %p1656_p9 }
 0x304   : > { %p1659_p5 = pnand %p1658_p12, %p1652_p2 }
 0x306   : > { %1662 = shalt.err (!%p1659_p5)
}
 0x307   : > { %s1663_s20 = scalar_lea.hbm %s1977_s12, %s1967_s9  ;;  %s1667_s8 = scalar_lea.hbm %s2031_s7, 192 }
 0x308   : > { %p1664_p8 = scmp.ne.s32.totalorder %s1977_s12, %s1663_s20  ;;  %p1668_p11 = scmp.lt.s32.totalorder %s1977_s12, %s2031_s7 }
 0x309   : > { %p1669_p10 = scmp.lt.s32.totalorder %s1667_s8, %s1663_s20 }
 0x30a   : > { %p1665_p13 = pnand %p1664_p8, %p1314_p1 }
 0x30b   : > { %p1670_p3 = por %p1669_p10, %p1668_p11 }
 0x30c   : > { %p1666_p6 = pneg %p1665_p13 }
 0x30e   : > { %p1671_p0 = pnand %p1670_p3, %p1666_p6 }
 0x310   : > { %1674 = shalt.err (!%p1671_p0)
}
 0x311   : > { %s1739_s21 = smov 64   ;;  %s1740_s13 = smov 4  }
 0x312   : > { %1121 = dma.vmem_to_hbm [thread:$0]  (%p1314_p1), %s1979_s15, %s1967_s9, %s1977_s12, %s1096_s29, %s1739_s21, %s1739_s21, %s1740_s13  }
 0x313 PF: > { %s1130_s17 = sand.u32 1, %s1709_s24   ;;  %p2049_p2 = scmp.ne.s32.totalorder %s2039_s14, 0 }
 0x314   : > { %s1131_s18 = scalar_lea.sflag [#allocation4], %s1130_s17 }
 0x315   : > { %p1387_p9 = pnand %p1222_p7, %p2049_p2 }
 0x317   : > { %p1388_p4 = pneg %p1387_p9 }
 0x319   : > { %1704 = dma.done.wait (%p1388_p4), %s1131_s18, 128  }
 0x31a   : > { %1706 = vsyncadd (%p1388_p4), %s1131_s18, 4294967168  ;;  %s2050_s22 = sld [smem:[#allocation15_spill]]  ;;  %p22_p12 = scmp.ge.s32.totalorder %s1806_s30, 4  }
 0x31b   : > { %s2051_s24 = smov %s1713_s25  ;;  %s2052_s25 = smov %s1717_s26 }
 0x31c   : > { %s2054_s27 = smov %s1806_s30  ;;  %24 = sbr.rel (!%p22_p12) target bundleno = 9 (0x9), region = 105 }
 0x320   : > { %s2053_s26 = smov %s2050_s22 }
 0x321   :  { %1136 = vsyncpa [#allocation3], 1 }
 0x322   :  { %1138 = vsyncpa [#allocation3 + $0x1], 1 }
 0x323   :  { %1139 = vsyncpa [#allocation6], 1 }
 0x324   :  { %1140 = vsyncpa [#allocation9], 1 }
 0x325   :  { %1141 = vsyncpa [#allocation4], 1 }
 0x326   :  { %1143 = vsyncpa [#allocation4 + $0x1], 1 }

</bundles_post_ra>
